<compile_context>
chip_gen: v7x
topology: tpu7x:2x2x1
jax: 0.10.0
libtpu: 0.0.40
codegen_flags: <defaults>
</compile_context>

<pallas_src>
import jax
import jax.numpy as jnp
from jax import lax
from jax.experimental import pallas as pl
from jax.experimental.pallas import tpu as pltpu


# ----------------------------------------------------------------------------- kernel


def _attn_decoder_kernel(
    # scalar prefetch (SMEM)
    tokens_ref,      # (T,) int32
    # VMEM inputs (constant index maps -> fetched once, resident for the whole call)
    emb_tbl_ref,     # (V, 1, Hp) bf16   embedding table, real cols [0,H)
    hid0_ref,        # (1, Hp)    f32    initial hidden, real lanes [H,2H)
    enc_ref,         # (Lp, Hp)   bf16   encoder outputs, real cols [H,2H)
    attn_w_ref,      # (Hp, Lp)   bf16   stacked attn weight (rows [0,H)=emb, [H,2H)=hid)
    attn_b_ref,      # (1, Lp)    f32    (-1e30 in padded lanes)
    comb_w_ref,      # (Hp, Hp)   bf16   stacked attn_combine weight
    comb_b_ref,      # (1, Hp)    f32
    wih_ref,         # (Hp, 3Hp)  bf16   GRU input->hidden, gates packed r|z|n
    whh_ref,         # (Hp, 3Hp)  bf16   GRU hidden->hidden, gates packed r|z|n
    b_i_ref,         # (1, 3Hp)   f32    bias_ih packed
    b_h_ref,         # (1, 3Hp)   f32    bias_hh packed
    outw_ref,        # (Hp, Vp)   bf16   out linear weight (rows [H,2H) real)
    outb_ref,        # (1, Vp)    f32    (-1e30 in padded lanes)
    # outputs
    logp_ref,        # (T, 1, Vp) f32
    hid_out_ref,     # (1, Hp)    f32
    attnw_ref,       # (T, 1, Lp) f32
):
    f32 = jnp.float32
    bf16 = jnp.bfloat16
    T = logp_ref.shape[0]
    Hp = hid0_ref.shape[-1]

    def step(t, h):
        tok = tokens_ref[t]
        embedded = emb_tbl_ref[tok]                      # (1, Hp) bf16, lanes [0,H)
        # TODO(synk): training-mode dropout on `embedded` not applied (eval mode).
        h_bf = h.astype(bf16)                            # real lanes [H,2H)

        # attn_weights = softmax(Linear_{2H->L}(cat(embedded, hidden)))  — one matmul
        packed_att = embedded + h_bf                     # disjoint lanes -> exact concat
        attn_logits = (jnp.dot(packed_att, attn_w_ref[...], preferred_element_type=f32)
                       + attn_b_ref[...])                # (1, Lp)
        m = jnp.max(attn_logits, axis=-1, keepdims=True)
        e = jnp.exp(attn_logits - m)                     # padded lanes -> 0
        attn_w = e * pl.reciprocal(jnp.sum(e, axis=-1, keepdims=True), approx=True)
        attnw_ref[t] = attn_w

        # attn_applied = attn_weights @ encoder_outputs  (lands in lanes [H,2H))
        attn_applied = jnp.dot(attn_w.astype(bf16), enc_ref[...],
                               preferred_element_type=f32)          # (1, Hp)

        # x = relu(Linear_{2H->H}(cat(embedded, attn_applied)))  — one matmul
        packed_comb = embedded + attn_applied.astype(bf16)
        combined = (jnp.dot(packed_comb, comb_w_ref[...], preferred_element_type=f32)
                    + comb_b_ref[...])
        x = jnp.maximum(combined, 0.0).astype(bf16)      # real lanes [0,H)

        # One GRU step (PyTorch gate order r,z,n), two fused (Hp,3Hp) matmuls.
        gi = jnp.dot(x, wih_ref[...], preferred_element_type=f32) + b_i_ref[...]
        gh = jnp.dot(h_bf, whh_ref[...], preferred_element_type=f32) + b_h_ref[...]
        rz = jax.nn.sigmoid(gi[:, :2 * Hp] + gh[:, :2 * Hp])       # (1, 2Hp)
        r = rz[:, :Hp]
        z = rz[:, Hp:]
        n = jnp.tanh(gi[:, 2 * Hp:] + r * gh[:, 2 * Hp:])
        h_new = (1.0 - z) * n + z * h                    # (1, Hp) f32, real [H,2H)

        # log_softmax(Linear_{H->V}(h_new))
        out_logits = (jnp.dot(h_new.astype(bf16), outw_ref[...],
                              preferred_element_type=f32) + outb_ref[...])  # (1, Vp)
        m2 = jnp.max(out_logits, axis=-1, keepdims=True)
        sh = out_logits - m2
        lse = jnp.log(jnp.sum(jnp.exp(sh), axis=-1, keepdims=True))
        logp_ref[t] = sh - lse
        return h_new

    h_final = lax.fori_loop(0, T, step, hid0_ref[...])
    hid_out_ref[...] = h_final


# ----------------------------------------------------------------------------- wrapper


def _rnd128(x):
    return ((x + 127) // 128) * 128


def prepare_kernel_params(p, H, V, L, Hp, Vp, Lp):
    """Pad / transpose / lane-place the logical (PyTorch-layout) params.

    Lane convention inside the kernel:
      embedded / x             -> lanes [0, H)
      hidden / attn_applied    -> lanes [H, 2H)
    GRU gate outputs live at lanes [H, 2H) of each 128-lane gate slice (r|z|n).
    Bias/weight padding MUST stay 0 (attn_b/out_b padding MUST stay -1e30).
    """
    f32, bf16 = jnp.float32, jnp.bfloat16
    NEG = -1e30
    sl_e = slice(0, H)
    sl_h = slice(H, 2 * H)

    emb3 = jnp.zeros((V, 1, Hp), bf16).at[:, 0, sl_e].set(p["emb"].astype(bf16))

    attn_wk = jnp.zeros((Hp, Lp), bf16)
    attn_wk = attn_wk.at[sl_e, :L].set(p["attn_w"][:, :H].T.astype(bf16))
    attn_wk = attn_wk.at[sl_h, :L].set(p["attn_w"][:, H:].T.astype(bf16))
    attn_b = jnp.full((1, Lp), NEG, f32).at[0, :L].set(p["attn_b"].astype(f32))

    comb_wk = jnp.zeros((Hp, Hp), bf16)
    comb_wk = comb_wk.at[sl_e, :H].set(p["comb_w"][:, :H].T.astype(bf16))
    comb_wk = comb_wk.at[sl_h, :H].set(p["comb_w"][:, H:].T.astype(bf16))
    comb_b = jnp.zeros((1, Hp), f32).at[0, :H].set(p["comb_b"].astype(f32))

    wih_k = jnp.zeros((Hp, 3 * Hp), bf16)
    whh_k = jnp.zeros((Hp, 3 * Hp), bf16)
    b_i = jnp.zeros((1, 3 * Hp), f32)
    b_h = jnp.zeros((1, 3 * Hp), f32)
    for g in range(3):                                   # gate order r, z, n
        src = slice(g * H, (g + 1) * H)
        dst = slice(g * Hp + H, g * Hp + 2 * H)          # gate outputs at lanes [H,2H)
        wih_k = wih_k.at[sl_e, dst].set(p["wih"][src].T.astype(bf16))
        whh_k = whh_k.at[sl_h, dst].set(p["whh"][src].T.astype(bf16))
        b_i = b_i.at[0, dst].set(p["bih"][src].astype(f32))
        b_h = b_h.at[0, dst].set(p["bhh"][src].astype(f32))

    outw_k = jnp.zeros((Hp, Vp), bf16).at[sl_h, :V].set(p["out_w"].T.astype(bf16))
    out_b = jnp.full((1, Vp), NEG, f32).at[0, :V].set(p["out_b"].astype(f32))

    return dict(emb3=emb3, attn_wk=attn_wk, attn_b=attn_b, comb_wk=comb_wk,
                comb_b=comb_b, wih_k=wih_k, whh_k=whh_k, b_i=b_i, b_h=b_h,
                outw_k=outw_k, out_b=out_b)


def attn_decoder_forward_seq(tokens, hidden, encoder_outputs, params, *,
                             hidden_size, output_size, max_length):
    """Fused multi-step decode (teacher forcing), single pallas_call.

    tokens: (T,) int32, hidden: (1,1,H) f32, encoder_outputs: (L,H) f32.
    Returns (log_probs (T,V), hidden (1,1,H), attn_weights (T,L)).
    All weights are fetched to VMEM once; the T-step loop runs inside the kernel.
    """
    H, V, L = hidden_size, output_size, max_length
    Hp, Vp, Lp = _rnd128(H), _rnd128(V), _rnd128(L)
    T = int(tokens.shape[0])

    kp = prepare_kernel_params(params, H, V, L, Hp, Vp, Lp)
    h0 = jnp.zeros((1, Hp), jnp.float32).at[0, H:2 * H].set(
        hidden.reshape(H).astype(jnp.float32))
    enc_k = jnp.zeros((Lp, Hp), jnp.bfloat16).at[:L, H:2 * H].set(
        encoder_outputs.astype(jnp.bfloat16))
    tokens = tokens.astype(jnp.int32)

    c2 = lambda i, tok: (0, 0)        # noqa: E731
    c3 = lambda i, tok: (0, 0, 0)     # noqa: E731
    in_specs = [
        pl.BlockSpec((V, 1, Hp), c3),        # embedding table (resident)
        pl.BlockSpec((1, Hp), c2),           # hidden0
        pl.BlockSpec((Lp, Hp), c2),          # encoder outputs
        pl.BlockSpec((Hp, Lp), c2),          # attn weight (stacked)
        pl.BlockSpec((1, Lp), c2),           # attn bias
        pl.BlockSpec((Hp, Hp), c2),          # attn_combine weight (stacked)
        pl.BlockSpec((1, Hp), c2),           # attn_combine bias
        pl.BlockSpec((Hp, 3 * Hp), c2),      # GRU wih (gates packed)
        pl.BlockSpec((Hp, 3 * Hp), c2),      # GRU whh (gates packed)
        pl.BlockSpec((1, 3 * Hp), c2),       # GRU bias_ih (packed)
        pl.BlockSpec((1, 3 * Hp), c2),       # GRU bias_hh (packed)
        pl.BlockSpec((Hp, Vp), c2),          # out weight
        pl.BlockSpec((1, Vp), c2),           # out bias
    ]
    out_specs = (
        pl.BlockSpec((T, 1, Vp), c3),        # per-step log-probs
        pl.BlockSpec((1, Hp), c2),           # final hidden
        pl.BlockSpec((T, 1, Lp), c3),        # per-step attention weights
    )

    grid_spec = pltpu.PrefetchScalarGridSpec(
        num_scalar_prefetch=1,
        grid=(1,),                           # time loop is inside the kernel
        in_specs=in_specs,
        out_specs=out_specs,
    )

    operands = (
        tokens, kp["emb3"], h0, enc_k,
        kp["attn_wk"], kp["attn_b"], kp["comb_wk"], kp["comb_b"],
        kp["wih_k"], kp["whh_k"], kp["b_i"], kp["b_h"],
        kp["outw_k"], kp["out_b"],
    )

    cost = pl.CostEstimate(
        flops=int(2 * T * (2 * Hp * Lp + Hp * Hp + 6 * Hp * Hp + Hp * Vp)),
        transcendentals=int(T * (Lp + Vp + 3 * Hp + 2)),
        bytes_accessed=int(sum(x.size * x.dtype.itemsize for x in operands)
                           + T * (Vp + Lp) * 4 + Hp * 4),
    )

    logp_p, hid_p, attnw_p = pl.pallas_call(
        _attn_decoder_kernel,
        out_shape=(
            jax.ShapeDtypeStruct((T, 1, Vp), jnp.float32),
            jax.ShapeDtypeStruct((1, Hp), jnp.float32),
            jax.ShapeDtypeStruct((T, 1, Lp), jnp.float32),
        ),
        grid_spec=grid_spec,
        compiler_params=pltpu.CompilerParams(
            dimension_semantics=("arbitrary",),
        ),
        cost_estimate=cost,
    )(*operands)

    logp = logp_p[:, 0, :V]
    hidden_out = hid_p[:, H:2 * H].reshape(1, 1, H)
    attn_w = attnw_p[:, 0, :L]
    return logp, hidden_out, attn_w


def attn_decoder_forward(token, hidden, encoder_outputs, params, *,
                         hidden_size, output_size, max_length):
    """Single-step forward, matching the PyTorch module API (token: (1,) int32)."""
    return attn_decoder_forward_seq(
        token.reshape(1), hidden, encoder_outputs, params,
        hidden_size=hidden_size, output_size=output_size, max_length=max_length)


# ----------------------------------------------------------------------------- params / reference


def init_params(key, hidden_size, output_size, max_length):
    """Deterministic synthetic parameters in PyTorch layout; weights in bf16."""
    H, V, L = hidden_size, output_size, max_length
    ks = jax.random.split(key, 11)
    s = 0.1
    f32, bf16 = jnp.float32, jnp.bfloat16
    w = lambda k, shape: (s * jax.random.normal(k, shape, f32)).astype(bf16)  # noqa: E731
    b = lambda k, shape: s * jax.random.normal(k, shape, f32)                 # noqa: E731
    return {
        "emb": w(ks[0], (V, H)),
        "attn_w": w(ks[1], (L, 2 * H)), "attn_b": b(ks[2], (L,)),
        "comb_w": w(ks[3], (H, 2 * H)), "comb_b": b(ks[4], (H,)),
        "wih": w(ks[5], (3 * H, H)), "whh": w(ks[6], (3 * H, H)),
        "bih": b(ks[7], (3 * H,)), "bhh": b(ks[8], (3 * H,)),
        "out_w": w(ks[9], (V, H)), "out_b": b(ks[10], (V,)),
    }


def ref_forward_step(token, hidden, encoder_outputs, p, hidden_size):
    """Pure-JAX reference of one PyTorch forward step (eval-mode dropout), using the
    same bf16 weights / bf16 matmul inputs (f32 accumulation) as the kernel."""
    H = hidden_size
    f32, bf16 = jnp.float32, jnp.bfloat16

    def mm(a, w):
        return jnp.dot(a.astype(bf16), w.astype(bf16), preferred_element_type=f32)

    enc = encoder_outputs.astype(bf16)
    e = p["emb"][token].reshape(1, H)
    h = hidden.reshape(1, H).astype(f32)

    logits = mm(e, p["attn_w"][:, :H].T) + mm(h, p["attn_w"][:, H:].T) + p["attn_b"][None, :]
    aw = jax.nn.softmax(logits, axis=-1)
    applied = mm(aw, enc)
    x = jnp.maximum(mm(e, p["comb_w"][:, :H].T) + mm(applied, p["comb_w"][:, H:].T)
                    + p["comb_b"][None, :], 0.0)

    wih, whh, bih, bhh = p["wih"], p["whh"], p["bih"], p["bhh"]
    gi_r = mm(x, wih[0:H].T) + bih[None, 0:H]
    gi_z = mm(x, wih[H:2 * H].T) + bih[None, H:2 * H]
    gi_n = mm(x, wih[2 * H:].T) + bih[None, 2 * H:]
    gh_r = mm(h, whh[0:H].T) + bhh[None, 0:H]
    gh_z = mm(h, whh[H:2 * H].T) + bhh[None, H:2 * H]
    gh_n = mm(h, whh[2 * H:].T) + bhh[None, 2 * H:]
    r = jax.nn.sigmoid(gi_r + gh_r)
    z = jax.nn.sigmoid(gi_z + gh_z)
    n = jnp.tanh(gi_n + r * gh_n)
    h_new = (1.0 - z) * n + z * h

    logp = jax.nn.log_softmax(mm(h_new, p["out_w"].T) + p["out_b"][None, :], axis=-1)
    return logp, h_new, aw


# ----------------------------------------------------------------------------- main


if __name__ == "__main__":
    HIDDEN = 32    # hidden_size
    OUTPUT = 40    # output_size (vocab)
    MAXLEN = 12    # max_length

    key = jax.random.PRNGKey(0)
    kp, kh, ke, kt = jax.random.split(key, 4)

    params = init_params(kp, HIDDEN, OUTPUT, MAXLEN)
    hidden0 = jax.random.normal(kh, (1, 1, HIDDEN), jnp.float32)
    encoder_outputs = jax.random.normal(ke, (MAXLEN, HIDDEN), jnp.float32)

    TOL = 2e-3  # bf16 weights + approx-EUP reciprocal vs. exact-division reference

    # ---- single step (exact module-forward semantics) ----
    token = jnp.array([3], dtype=jnp.int32)
    logp, h_new, attn_w = attn_decoder_forward(
        token, hidden0, encoder_outputs, params,
        hidden_size=HIDDEN, output_size=OUTPUT, max_length=MAXLEN)
    jax.block_until_ready((logp, h_new, attn_w))

    r_logp, r_h, r_aw = ref_forward_step(3, hidden0, encoder_outputs, params, HIDDEN)
    assert logp.shape == (1, OUTPUT) and h_new.shape == (1, 1, HIDDEN) and attn_w.shape == (1, MAXLEN)
    assert jnp.allclose(logp, r_logp, atol=TOL), "log-probs mismatch"
    assert jnp.allclose(h_new.reshape(1, HIDDEN), r_h, atol=TOL), "hidden mismatch"
    assert jnp.allclose(attn_w, r_aw, atol=TOL), "attn weights mismatch"

    # ---- fused multi-step decode (time loop inside the kernel) ----
    T = 4
    tokens = jax.random.randint(kt, (T,), 0, OUTPUT, dtype=jnp.int32)
    logps, h_T, attns = attn_decoder_forward_seq(
        tokens, hidden0, encoder_outputs, params,
        hidden_size=HIDDEN, output_size=OUTPUT, max_length=MAXLEN)
    jax.block_until_ready((logps, h_T, attns))

    h_ref = hidden0
    for t in range(T):
        rl, h_ref, ra = ref_forward_step(int(tokens[t]), h_ref, encoder_outputs, params, HIDDEN)
        assert jnp.allclose(logps[t], rl[0], atol=TOL), f"step {t}: log-probs mismatch"
        assert jnp.allclose(attns[t], ra[0], atol=TOL), f"step {t}: attn weights mismatch"
    assert jnp.allclose(h_T.reshape(1, HIDDEN), h_ref.reshape(1, HIDDEN), atol=TOL), \
        "final hidden mismatch"

    print("KERNEL_OK")
</pallas_src>

<mosaic_0001>
module attributes {stable_mosaic.version = 11 : i64} {
  func.func @_attn_decoder_kernel(%arg0: i32, %arg1: memref<1xi32, #tpu.memory_space<smem>>, %arg2: memref<40x1x128xbf16, #tpu.memory_space<vmem>>, %arg3: memref<1x128xf32, #tpu.memory_space<vmem>>, %arg4: memref<128x128xbf16, #tpu.memory_space<vmem>>, %arg5: memref<128x128xbf16, #tpu.memory_space<vmem>>, %arg6: memref<1x128xf32, #tpu.memory_space<vmem>>, %arg7: memref<128x128xbf16, #tpu.memory_space<vmem>>, %arg8: memref<1x128xf32, #tpu.memory_space<vmem>>, %arg9: memref<128x384xbf16, #tpu.memory_space<vmem>>, %arg10: memref<128x384xbf16, #tpu.memory_space<vmem>>, %arg11: memref<1x384xf32, #tpu.memory_space<vmem>>, %arg12: memref<1x384xf32, #tpu.memory_space<vmem>>, %arg13: memref<128x128xbf16, #tpu.memory_space<vmem>>, %arg14: memref<1x128xf32, #tpu.memory_space<vmem>>, %arg15: memref<1x1x128xf32, #tpu.memory_space<vmem>>, %arg16: memref<1x128xf32, #tpu.memory_space<vmem>>, %arg17: memref<1x1x128xf32, #tpu.memory_space<vmem>>) attributes {dimension_semantics = [#tpu.dimension_semantics<arbitrary>], iteration_bounds = array<i64: 1>, scalar_prefetch = 1 : i64, scratch_operands = 0 : i64, tpu.core_type = #tpu.core_type<tc>, window_params = [{pipeline_mode = #tpu.pipeline_mode<synchronous>, transform_indices = @transform_0, window_bounds = array<i64: 40, 1, 128>}, {pipeline_mode = #tpu.pipeline_mode<synchronous>, transform_indices = @transform_1, window_bounds = array<i64: 1, 128>}, {pipeline_mode = #tpu.pipeline_mode<synchronous>, transform_indices = @transform_2, window_bounds = array<i64: 128, 128>}, {pipeline_mode = #tpu.pipeline_mode<synchronous>, transform_indices = @transform_3, window_bounds = array<i64: 128, 128>}, {pipeline_mode = #tpu.pipeline_mode<synchronous>, transform_indices = @transform_4, window_bounds = array<i64: 1, 128>}, {pipeline_mode = #tpu.pipeline_mode<synchronous>, transform_indices = @transform_5, window_bounds = array<i64: 128, 128>}, {pipeline_mode = #tpu.pipeline_mode<synchronous>, transform_indices = @transform_6, window_bounds = array<i64: 1, 128>}, {pipeline_mode = #tpu.pipeline_mode<synchronous>, transform_indices = @transform_7, window_bounds = array<i64: 128, 384>}, {pipeline_mode = #tpu.pipeline_mode<synchronous>, transform_indices = @transform_8, window_bounds = array<i64: 128, 384>}, {pipeline_mode = #tpu.pipeline_mode<synchronous>, transform_indices = @transform_9, window_bounds = array<i64: 1, 384>}, {pipeline_mode = #tpu.pipeline_mode<synchronous>, transform_indices = @transform_10, window_bounds = array<i64: 1, 384>}, {pipeline_mode = #tpu.pipeline_mode<synchronous>, transform_indices = @transform_11, window_bounds = array<i64: 128, 128>}, {pipeline_mode = #tpu.pipeline_mode<synchronous>, transform_indices = @transform_12, window_bounds = array<i64: 1, 128>}, {pipeline_mode = #tpu.pipeline_mode<synchronous>, transform_indices = @transform_13, window_bounds = array<i64: 1, 1, 128>}, {pipeline_mode = #tpu.pipeline_mode<synchronous>, transform_indices = @transform_14, window_bounds = array<i64: 1, 128>}, {pipeline_mode = #tpu.pipeline_mode<synchronous>, transform_indices = @transform_15, window_bounds = array<i64: 1, 1, 128>}]} {
    %c0 = arith.constant 0 : index
    %c0_0 = arith.constant 0 : index
    %0 = vector.load %arg3[%c0, %c0_0] : memref<1x128xf32, #tpu.memory_space<vmem>>, vector<1x128xf32>
    %c0_i32 = arith.constant 0 : i32
    %1 = arith.index_cast %c0_i32 : i32 to index
    %2 = memref.load %arg1[%1] : memref<1xi32, #tpu.memory_space<smem>>
    %3 = arith.index_cast %2 : i32 to index
    %c0_1 = arith.constant 0 : index
    %c0_2 = arith.constant 0 : index
    %4 = vector.load %arg2[%3, %c0_1, %c0_2] : memref<40x1x128xbf16, #tpu.memory_space<vmem>>, vector<1x1x128xbf16>
    %5 = vector.shape_cast %4 : vector<1x1x128xbf16> to vector<1x128xbf16>
    %6 = arith.truncf %0 : vector<1x128xf32> to vector<1x128xbf16>
    %7 = arith.addf %5, %6 : vector<1x128xbf16>
    %c0_3 = arith.constant 0 : index
    %c0_4 = arith.constant 0 : index
    %8 = vector.load %arg5[%c0_3, %c0_4] : memref<128x128xbf16, #tpu.memory_space<vmem>>, vector<128x128xbf16>
    %cst = arith.constant dense<0.000000e+00> : vector<1x128xf32>
    %9 = tpu.matmul %7, %8, %cst {dimension_numbers = #tpu.dot_dimension_numbers<[1], [0], [0], [1], [0, 0, 1, 1], [], []>} : vector<1x128xbf16>, vector<128x128xbf16>, vector<1x128xf32> -> vector<1x128xf32>
    %c0_5 = arith.constant 0 : index
    %c0_6 = arith.constant 0 : index
    %10 = vector.load %arg6[%c0_5, %c0_6] : memref<1x128xf32, #tpu.memory_space<vmem>>, vector<1x128xf32>
    %11 = arith.addf %9, %10 : vector<1x128xf32>
    %cst_7 = arith.constant dense<0xFF800000> : vector<1xf32>
    %12 = vector.multi_reduction <maximumf>, %11, %cst_7 [1] : vector<1x128xf32> to vector<1xf32>
    %13 = vector.shape_cast %12 : vector<1xf32> to vector<1x1xf32>
    %14 = vector.broadcast %13 : vector<1x1xf32> to vector<1x128xf32>
    %15 = arith.subf %11, %14 : vector<1x128xf32>
    %16 = math.exp %15 : vector<1x128xf32>
    %cst_8 = arith.constant dense<0.000000e+00> : vector<1xf32>
    %17 = vector.multi_reduction <add>, %16, %cst_8 [1] : vector<1x128xf32> to vector<1xf32>
    %18 = vector.shape_cast %17 : vector<1xf32> to vector<1x1xf32>
    %19 = tpu.reciprocal %18 {approx = true} : vector<1x1xf32> -> vector<1x1xf32>
    %20 = vector.broadcast %19 : vector<1x1xf32> to vector<1x128xf32>
    %21 = arith.mulf %16, %20 : vector<1x128xf32>
    %22 = arith.index_cast %c0_i32 : i32 to index
    %c0_9 = arith.constant 0 : index
    %c0_10 = arith.constant 0 : index
    %23 = vector.load %arg17[%22, %c0_9, %c0_10] : memref<1x1x128xf32, #tpu.memory_space<vmem>>, vector<1x1x128xf32>
    %24 = vector.shape_cast %23 : vector<1x1x128xf32> to vector<1x128xf32>
    %25 = vector.shape_cast %21 : vector<1x128xf32> to vector<1x1x128xf32>
    tpu.vector_store %arg17[%22, %c0_9, %c0_10], %25 {strides = array<i32>} : memref<1x1x128xf32, #tpu.memory_space<vmem>>, vector<1x1x128xf32>,
    %26 = arith.truncf %21 : vector<1x128xf32> to vector<1x128xbf16>
    %c0_11 = arith.constant 0 : index
    %c0_12 = arith.constant 0 : index
    %27 = vector.load %arg4[%c0_11, %c0_12] : memref<128x128xbf16, #tpu.memory_space<vmem>>, vector<128x128xbf16>
    %cst_13 = arith.constant dense<0.000000e+00> : vector<1x128xf32>
    %28 = tpu.matmul %26, %27, %cst_13 {dimension_numbers = #tpu.dot_dimension_numbers<[1], [0], [0], [1], [0, 0, 1, 1], [], []>} : vector<1x128xbf16>, vector<128x128xbf16>, vector<1x128xf32> -> vector<1x128xf32>
    %29 = arith.truncf %28 : vector<1x128xf32> to vector<1x128xbf16>
    %30 = arith.addf %5, %29 : vector<1x128xbf16>
    %c0_14 = arith.constant 0 : index
    %c0_15 = arith.constant 0 : index
    %31 = vector.load %arg7[%c0_14, %c0_15] : memref<128x128xbf16, #tpu.memory_space<vmem>>, vector<128x128xbf16>
    %cst_16 = arith.constant dense<0.000000e+00> : vector<1x128xf32>
    %32 = tpu.matmul %30, %31, %cst_16 {dimension_numbers = #tpu.dot_dimension_numbers<[1], [0], [0], [1], [0, 0, 1, 1], [], []>} : vector<1x128xbf16>, vector<128x128xbf16>, vector<1x128xf32> -> vector<1x128xf32>
    %c0_17 = arith.constant 0 : index
    %c0_18 = arith.constant 0 : index
    %33 = vector.load %arg8[%c0_17, %c0_18] : memref<1x128xf32, #tpu.memory_space<vmem>>, vector<1x128xf32>
    %34 = arith.addf %32, %33 : vector<1x128xf32>
    %cst_19 = arith.constant 0.000000e+00 : f32
    %35 = vector.broadcast %cst_19 : f32 to vector<1x128xf32>
    %36 = arith.maximumf %34, %35 : vector<1x128xf32>
    %37 = arith.truncf %36 : vector<1x128xf32> to vector<1x128xbf16>
    %c0_20 = arith.constant 0 : index
    %c0_21 = arith.constant 0 : index
    %38 = vector.load %arg9[%c0_20, %c0_21] : memref<128x384xbf16, #tpu.memory_space<vmem>>, vector<128x384xbf16>
    %cst_22 = arith.constant dense<0.000000e+00> : vector<1x384xf32>
    %39 = tpu.matmul %37, %38, %cst_22 {dimension_numbers = #tpu.dot_dimension_numbers<[1], [0], [0], [1], [0, 0, 1, 1], [], []>} : vector<1x128xbf16>, vector<128x384xbf16>, vector<1x384xf32> -> vector<1x384xf32>
    %c0_23 = arith.constant 0 : index
    %c0_24 = arith.constant 0 : index
    %40 = vector.load %arg11[%c0_23, %c0_24] : memref<1x384xf32, #tpu.memory_space<vmem>>, vector<1x384xf32>
    %41 = arith.addf %39, %40 : vector<1x384xf32>
    %c0_25 = arith.constant 0 : index
    %c0_26 = arith.constant 0 : index
    %42 = vector.load %arg10[%c0_25, %c0_26] : memref<128x384xbf16, #tpu.memory_space<vmem>>, vector<128x384xbf16>
    %cst_27 = arith.constant dense<0.000000e+00> : vector<1x384xf32>
    %43 = tpu.matmul %6, %42, %cst_27 {dimension_numbers = #tpu.dot_dimension_numbers<[1], [0], [0], [1], [0, 0, 1, 1], [], []>} : vector<1x128xbf16>, vector<128x384xbf16>, vector<1x384xf32> -> vector<1x384xf32>
    %c0_28 = arith.constant 0 : index
    %c0_29 = arith.constant 0 : index
    %44 = vector.load %arg12[%c0_28, %c0_29] : memref<1x384xf32, #tpu.memory_space<vmem>>, vector<1x384xf32>
    %45 = arith.addf %43, %44 : vector<1x384xf32>
    %46 = vector.extract_strided_slice %41 {offsets = [0, 0], sizes = [1, 256], strides = [1, 1]} : vector<1x384xf32> to vector<1x256xf32>
    %47 = vector.extract_strided_slice %45 {offsets = [0, 0], sizes = [1, 256], strides = [1, 1]} : vector<1x384xf32> to vector<1x256xf32>
    %48 = arith.addf %46, %47 : vector<1x256xf32>
    %49 = arith.negf %48 : vector<1x256xf32>
    %50 = math.exp %49 : vector<1x256xf32>
    %cst_30 = arith.constant 1.000000e+00 : f32
    %51 = vector.broadcast %cst_30 : f32 to vector<1x256xf32>
    %52 = arith.addf %51, %50 : vector<1x256xf32>
    %53 = arith.divf %51, %52 : vector<1x256xf32>
    %54 = vector.extract_strided_slice %53 {offsets = [0, 0], sizes = [1, 128], strides = [1, 1]} : vector<1x256xf32> to vector<1x128xf32>
    %55 = vector.extract_strided_slice %53 {offsets = [0, 128], sizes = [1, 128], strides = [1, 1]} : vector<1x256xf32> to vector<1x128xf32>
    %56 = vector.extract_strided_slice %41 {offsets = [0, 256], sizes = [1, 128], strides = [1, 1]} : vector<1x384xf32> to vector<1x128xf32>
    %57 = vector.extract_strided_slice %45 {offsets = [0, 256], sizes = [1, 128], strides = [1, 1]} : vector<1x384xf32> to vector<1x128xf32>
    %58 = arith.mulf %54, %57 : vector<1x128xf32>
    %59 = arith.addf %56, %58 : vector<1x128xf32>
    %60 = math.tanh %59 : vector<1x128xf32>
    %cst_31 = arith.constant 1.000000e+00 : f32
    %61 = vector.broadcast %cst_31 : f32 to vector<1x128xf32>
    %62 = arith.subf %61, %55 : vector<1x128xf32>
    %63 = arith.mulf %62, %60 : vector<1x128xf32>
    %64 = arith.mulf %55, %0 : vector<1x128xf32>
    %65 = arith.addf %63, %64 : vector<1x128xf32>
    %66 = arith.truncf %65 : vector<1x128xf32> to vector<1x128xbf16>
    %c0_32 = arith.constant 0 : index
    %c0_33 = arith.constant 0 : index
    %67 = vector.load %arg13[%c0_32, %c0_33] : memref<128x128xbf16, #tpu.memory_space<vmem>>, vector<128x128xbf16>
    %cst_34 = arith.constant dense<0.000000e+00> : vector<1x128xf32>
    %68 = tpu.matmul %66, %67, %cst_34 {dimension_numbers = #tpu.dot_dimension_numbers<[1], [0], [0], [1], [0, 0, 1, 1], [], []>} : vector<1x128xbf16>, vector<128x128xbf16>, vector<1x128xf32> -> vector<1x128xf32>
    %c0_35 = arith.constant 0 : index
    %c0_36 = arith.constant 0 : index
    %69 = vector.load %arg14[%c0_35, %c0_36] : memref<1x128xf32, #tpu.memory_space<vmem>>, vector<1x128xf32>
    %70 = arith.addf %68, %69 : vector<1x128xf32>
    %cst_37 = arith.constant dense<0xFF800000> : vector<1xf32>
    %71 = vector.multi_reduction <maximumf>, %70, %cst_37 [1] : vector<1x128xf32> to vector<1xf32>
    %72 = vector.shape_cast %71 : vector<1xf32> to vector<1x1xf32>
    %73 = vector.broadcast %72 : vector<1x1xf32> to vector<1x128xf32>
    %74 = arith.subf %70, %73 : vector<1x128xf32>
    %75 = math.exp %74 : vector<1x128xf32>
    %cst_38 = arith.constant dense<0.000000e+00> : vector<1xf32>
    %76 = vector.multi_reduction <add>, %75, %cst_38 [1] : vector<1x128xf32> to vector<1xf32>
    %77 = vector.shape_cast %76 : vector<1xf32> to vector<1x1xf32>
    %78 = math.log %77 : vector<1x1xf32>
    %79 = vector.broadcast %78 : vector<1x1xf32> to vector<1x128xf32>
    %80 = arith.subf %74, %79 : vector<1x128xf32>
    %81 = arith.index_cast %c0_i32 : i32 to index
    %c0_39 = arith.constant 0 : index
    %c0_40 = arith.constant 0 : index
    %82 = vector.load %arg15[%81, %c0_39, %c0_40] : memref<1x1x128xf32, #tpu.memory_space<vmem>>, vector<1x1x128xf32>
    %83 = vector.shape_cast %82 : vector<1x1x128xf32> to vector<1x128xf32>
    %84 = vector.shape_cast %80 : vector<1x128xf32> to vector<1x1x128xf32>
    tpu.vector_store %arg15[%81, %c0_39, %c0_40], %84 {strides = array<i32>} : memref<1x1x128xf32, #tpu.memory_space<vmem>>, vector<1x1x128xf32>,
    %c1_i32 = arith.constant 1 : i32
    %c0_41 = arith.constant 0 : index
    %c0_42 = arith.constant 0 : index
    %85 = vector.load %arg16[%c0_41, %c0_42] : memref<1x128xf32, #tpu.memory_space<vmem>>, vector<1x128xf32>
    tpu.vector_store %arg16[%c0_41, %c0_42], %65 {strides = array<i32>} : memref<1x128xf32, #tpu.memory_space<vmem>>, vector<1x128xf32>,
    return
  }
  func.func @transform_0(%arg0: i32, %arg1: memref<1xi32, #tpu.memory_space<smem>>) -> (i32, i32, i32) {
    %c0_i32 = arith.constant 0 : i32
    %c0_i32_0 = arith.constant 0 : i32
    %c0_i32_1 = arith.constant 0 : i32
    %c0_i32_2 = arith.constant 0 : i32
    return %c0_i32, %c0_i32_0, %c0_i32_1 : i32, i32, i32
  }
  func.func @transform_1(%arg0: i32, %arg1: memref<1xi32, #tpu.memory_space<smem>>) -> (i32, i32) {
    %c0_i32 = arith.constant 0 : i32
    %c0_i32_0 = arith.constant 0 : i32
    %c0_i32_1 = arith.constant 0 : i32
    return %c0_i32, %c0_i32_0 : i32, i32
  }
  func.func @transform_2(%arg0: i32, %arg1: memref<1xi32, #tpu.memory_space<smem>>) -> (i32, i32) {
    %c0_i32 = arith.constant 0 : i32
    %c0_i32_0 = arith.constant 0 : i32
    %c0_i32_1 = arith.constant 0 : i32
    return %c0_i32, %c0_i32_0 : i32, i32
  }
  func.func @transform_3(%arg0: i32, %arg1: memref<1xi32, #tpu.memory_space<smem>>) -> (i32, i32) {
    %c0_i32 = arith.constant 0 : i32
    %c0_i32_0 = arith.constant 0 : i32
    %c0_i32_1 = arith.constant 0 : i32
    return %c0_i32, %c0_i32_0 : i32, i32
  }
  func.func @transform_4(%arg0: i32, %arg1: memref<1xi32, #tpu.memory_space<smem>>) -> (i32, i32) {
    %c0_i32 = arith.constant 0 : i32
    %c0_i32_0 = arith.constant 0 : i32
    %c0_i32_1 = arith.constant 0 : i32
    return %c0_i32, %c0_i32_0 : i32, i32
  }
  func.func @transform_5(%arg0: i32, %arg1: memref<1xi32, #tpu.memory_space<smem>>) -> (i32, i32) {
    %c0_i32 = arith.constant 0 : i32
    %c0_i32_0 = arith.constant 0 : i32
    %c0_i32_1 = arith.constant 0 : i32
    return %c0_i32, %c0_i32_0 : i32, i32
  }
  func.func @transform_6(%arg0: i32, %arg1: memref<1xi32, #tpu.memory_space<smem>>) -> (i32, i32) {
    %c0_i32 = arith.constant 0 : i32
    %c0_i32_0 = arith.constant 0 : i32
    %c0_i32_1 = arith.constant 0 : i32
    return %c0_i32, %c0_i32_0 : i32, i32
  }
  func.func @transform_7(%arg0: i32, %arg1: memref<1xi32, #tpu.memory_space<smem>>) -> (i32, i32) {
    %c0_i32 = arith.constant 0 : i32
    %c0_i32_0 = arith.constant 0 : i32
    %c0_i32_1 = arith.constant 0 : i32
    return %c0_i32, %c0_i32_0 : i32, i32
  }
  func.func @transform_8(%arg0: i32, %arg1: memref<1xi32, #tpu.memory_space<smem>>) -> (i32, i32) {
    %c0_i32 = arith.constant 0 : i32
    %c0_i32_0 = arith.constant 0 : i32
    %c0_i32_1 = arith.constant 0 : i32
    return %c0_i32, %c0_i32_0 : i32, i32
  }
  func.func @transform_9(%arg0: i32, %arg1: memref<1xi32, #tpu.memory_space<smem>>) -> (i32, i32) {
    %c0_i32 = arith.constant 0 : i32
    %c0_i32_0 = arith.constant 0 : i32
    %c0_i32_1 = arith.constant 0 : i32
    return %c0_i32, %c0_i32_0 : i32, i32
  }
  func.func @transform_10(%arg0: i32, %arg1: memref<1xi32, #tpu.memory_space<smem>>) -> (i32, i32) {
    %c0_i32 = arith.constant 0 : i32
    %c0_i32_0 = arith.constant 0 : i32
    %c0_i32_1 = arith.constant 0 : i32
    return %c0_i32, %c0_i32_0 : i32, i32
  }
  func.func @transform_11(%arg0: i32, %arg1: memref<1xi32, #tpu.memory_space<smem>>) -> (i32, i32) {
    %c0_i32 = arith.constant 0 : i32
    %c0_i32_0 = arith.constant 0 : i32
    %c0_i32_1 = arith.constant 0 : i32
    return %c0_i32, %c0_i32_0 : i32, i32
  }
  func.func @transform_12(%arg0: i32, %arg1: memref<1xi32, #tpu.memory_space<smem>>) -> (i32, i32) {
    %c0_i32 = arith.constant 0 : i32
    %c0_i32_0 = arith.constant 0 : i32
    %c0_i32_1 = arith.constant 0 : i32
    return %c0_i32, %c0_i32_0 : i32, i32
  }
  func.func @transform_13(%arg0: i32, %arg1: memref<1xi32, #tpu.memory_space<smem>>) -> (i32, i32, i32) {
    %c0_i32 = arith.constant 0 : i32
    %c0_i32_0 = arith.constant 0 : i32
    %c0_i32_1 = arith.constant 0 : i32
    %c0_i32_2 = arith.constant 0 : i32
    return %c0_i32, %c0_i32_0, %c0_i32_1 : i32, i32, i32
  }
  func.func @transform_14(%arg0: i32, %arg1: memref<1xi32, #tpu.memory_space<smem>>) -> (i32, i32) {
    %c0_i32 = arith.constant 0 : i32
    %c0_i32_0 = arith.constant 0 : i32
    %c0_i32_1 = arith.constant 0 : i32
    return %c0_i32, %c0_i32_0 : i32, i32
  }
  func.func @transform_15(%arg0: i32, %arg1: memref<1xi32, #tpu.memory_space<smem>>) -> (i32, i32, i32) {
    %c0_i32 = arith.constant 0 : i32
    %c0_i32_0 = arith.constant 0 : i32
    %c0_i32_1 = arith.constant 0 : i32
    %c0_i32_2 = arith.constant 0 : i32
    return %c0_i32, %c0_i32_0, %c0_i32_1 : i32, i32, i32
  }
}

</mosaic_0001>

<bundles_post_ra>
// kernel: tpu_custom_call.1
= control target key start
LH: loop header
LB: loop body
LE: loop exit
PB: predicated region body
PF: predicated region fallthrough
CT: control target
= control target key end

     0   :  { %s2076_s0 = inlined_call_operand.<no memory space> [shape: s32[1], index: 0, kind: input, shape index: {}]   ;;  %s2077_s1 = inlined_call_operand.vmem [shape: bf16[40,1,128], index: 1, kind: input, shape index: {}]   ;;  %s2078_s2 = inlined_call_operand.vmem [shape: f32[1,128], index: 2, kind: input, shape index: {}]   ;;  %s2079_s3 = inlined_call_operand.vmem [shape: bf16[128,128], index: 3, kind: input, shape index: {}]   ;;  %s2080_s4 = inlined_call_operand.hbm [shape: bf16[128,128], index: 4, kind: input, shape index: {}]   ;;  %s2081_s5 = inlined_call_operand.vmem [shape: f32[1,128], index: 5, kind: input, shape index: {}]   ;;  %s2082_s6 = inlined_call_operand.hbm [shape: bf16[128,128], index: 6, kind: input, shape index: {}]   ;;  %s2083_s7 = inlined_call_operand.vmem [shape: f32[1,128], index: 7, kind: input, shape index: {}]   ;;  %s2084_s8 = inlined_call_operand.hbm [shape: bf16[128,384], index: 8, kind: input, shape index: {}]   ;;  %s2085_s9 = inlined_call_operand.hbm [shape: bf16[128,384], index: 9, kind: input, shape index: {}]   ;;  %s2086_s10 = inlined_call_operand.vmem [shape: f32[1,384], index: 10, kind: input, shape index: {}]   ;;  %s2087_s11 = inlined_call_operand.vmem [shape: f32[1,384], index: 11, kind: input, shape index: {}]   ;;  %s2088_s12 = inlined_call_operand.hbm [shape: bf16[128,128], index: 12, kind: input, shape index: {}]   ;;  %s2089_s13 = inlined_call_operand.vmem [shape: f32[1,128], index: 13, kind: input, shape index: {}]   ;;  %s2090_s14 = inlined_call_operand.hbm [shape: f32[1,1,128], index: 14, kind: output, shape index: {0}]   ;;  %s2091_s15 = inlined_call_operand.hbm [shape: f32[1,128], index: 15, kind: output, shape index: {1}]   ;;  %s2092_s16 = inlined_call_operand.hbm [shape: f32[1,1,128], index: 16, kind: output, shape index: {2}]  }
   0x1   :  { %2094 = sst [smem:[#allocation22_spill]] %s2076_s0 }
   0x2   :  { %2095 = sst [smem:[#allocation23_spill]] %s2090_s14 }
   0x3   :  { %23 = vsyncpa [#allocation5], 0 }
   0x4   :  { %24 = vsyncpa [#allocation8], 0 }
   0x5   :  { %25 = vsyncpa [#allocation11], 0 }
   0x6   :  { %26 = vsyncpa [#allocation6], 0 }
   0x7   :  { %27 = vsyncpa [#allocation15], 0  ;;  %s1739_s21 = smov [#allocation7]   ;;  %s1553_s25 = scalar_lea.hbm %s2082_s6, 1024 }
   0x8   :  { %s53_s22 = sshll.u32 %s1739_s21, 4  ;;  %p1554_p0 = scmp.ne.s32.totalorder %s2082_s6, %s1553_s25  ;;  %s54_s22 = int_to_ptr.vmem [resolvable:$true] %s53_s22 }
   0x9   :  { %p1557_p1 = scmp.lt.u32.totalorder %s1553_s25, %s2082_s6 }
   0xb   :  { %p1559_p2 = pnand %p1557_p1, %p1554_p0 }
   0xd   :  { %1562 = shalt.err (!%p1559_p2)
}
   0xe   :  { %s1563_s30 = scalar_lea.vmem %s54_s22, 1024  ;;  %p1568_p4 = scmp.lt.s32.totalorder %s54_s22, %s54_s22 }
   0xf   :  { %p1564_p3 = scmp.ne.s32.totalorder %s54_s22, %s1563_s30  ;;  %p1569_p5 = scmp.lt.s32.totalorder %s1563_s30, %s1563_s30 }
  0x11   :  { %p1570_p6 = por %p1569_p5, %p1568_p4 }
  0x13   :  { %p1571_p7 = pnand %p1570_p6, %p1564_p3 }
  0x15   :  { %1574 = shalt.err (!%p1571_p7)
}
  0x16   :  { %s1740_s0 = smov 64   ;;  %s1741_s17 = smov 4  }
  0x17   :  { %59 = dma.hbm_to_vmem [thread:$0]  %s2082_s6, 1024, %s54_s22, [#allocation8], %s1740_s0, %s1740_s0, %s1741_s17  }
  0x18   :  { %s1742_s20 = smov [#allocation10]   ;;  %s1743_s23 = smov [#allocation4]  }
  0x19   :  { %s79_s21 = sshll.u32 %s1742_s20, 4  ;;  %s39_s24 = sshll.u32 %s1743_s23, 4  ;;  %s80_s21 = int_to_ptr.vmem [resolvable:$true] %s79_s21  ;;  %s40_s24 = int_to_ptr.vmem [resolvable:$true] %s39_s24 }
  0x1a   :  { %s1575_s27 = scalar_lea.hbm %s2085_s9, 3072 }
  0x1b   :  { %p1576_p8 = scmp.ne.s32.totalorder %s2085_s9, %s1575_s27  ;;  %p1579_p9 = scmp.lt.u32.totalorder %s1575_s27, %s2085_s9 }
  0x1d   :  { %p1581_p10 = pnand %p1579_p9, %p1576_p8 }
  0x1f   :  { %1584 = shalt.err (!%p1581_p10)
}
  0x20   :  { %s1585_s6 = scalar_lea.vmem %s80_s21, 3072  ;;  %p1590_p12 = scmp.lt.s32.totalorder %s80_s21, %s80_s21 }
  0x21   :  { %p1586_p11 = scmp.ne.s32.totalorder %s80_s21, %s1585_s6  ;;  %p1591_p13 = scmp.lt.s32.totalorder %s1585_s6, %s1585_s6 }
  0x23   :  { %p1592_p0 = por %p1591_p13, %p1590_p12 }
  0x25   :  { %p1593_p1 = pnand %p1592_p0, %p1586_p11 }
  0x27   :  { %1596 = shalt.err (!%p1593_p1)
}
  0x28   :  { %s1744_s22 = smov 192   ;;  %s1745_s18 = smov 12  }
  0x29   :  { %85 = dma.hbm_to_vmem [thread:$0]  %s2085_s9, 3072, %s80_s21, [#allocation11], %s1744_s22, %s1744_s22, %s1745_s18  }
  0x2a   :  { %s1597_s25 = scalar_lea.hbm %s2080_s4, 1024 }
  0x2b   :  { %p1598_p2 = scmp.ne.s32.totalorder %s2080_s4, %s1597_s25  ;;  %p1601_p3 = scmp.lt.u32.totalorder %s1597_s25, %s2080_s4 }
  0x2d   :  { %p1603_p4 = pnand %p1601_p3, %p1598_p2 }
  0x2f   :  { %1606 = shalt.err (!%p1603_p4)
}
  0x30   :  { %s1607_s30 = scalar_lea.vmem %s40_s24, 1024  ;;  %p1612_p6 = scmp.lt.s32.totalorder %s40_s24, %s40_s24 }
  0x31   :  { %p1608_p5 = scmp.ne.s32.totalorder %s40_s24, %s1607_s30  ;;  %p1613_p7 = scmp.lt.s32.totalorder %s1607_s30, %s1607_s30 }
  0x33   :  { %p1614_p8 = por %p1613_p7, %p1612_p6 }
  0x35   :  { %p1615_p9 = pnand %p1614_p8, %p1608_p5 }
  0x37   :  { %1618 = shalt.err (!%p1615_p9)
}
  0x38   :  { %45 = dma.hbm_to_vmem [thread:$0]  %s2080_s4, 1024, %s40_s24, [#allocation5], %s1740_s0, %s1740_s0, %s1741_s17  }
  0x39   :  { %s1746_s6 = smov [#allocation9]   ;;  %s1747_s20 = smov [#allocation12]  }
  0x3a   :  { %s67_s19 = sshll.u32 %s1746_s6, 4  ;;  %s95_s14 = sshll.u32 %s1747_s20, 4  ;;  %s68_s19 = int_to_ptr.vmem [resolvable:$true] %s67_s19  ;;  %s96_s14 = int_to_ptr.vmem [resolvable:$true] %s95_s14 }
  0x3b   :  { %s1619_s26 = scalar_lea.hbm %s2084_s8, 3072 }
  0x3c   :  { %p1620_p10 = scmp.ne.s32.totalorder %s2084_s8, %s1619_s26  ;;  %p1623_p11 = scmp.lt.u32.totalorder %s1619_s26, %s2084_s8 }
  0x3e   :  { %p1625_p12 = pnand %p1623_p11, %p1620_p10 }
  0x40   :  { %1628 = shalt.err (!%p1625_p12)
}
  0x41   :  { %s1629_s4 = scalar_lea.vmem %s68_s19, 3072  ;;  %p1634_p0 = scmp.lt.s32.totalorder %s68_s19, %s68_s19 }
  0x42   :  { %p1630_p13 = scmp.ne.s32.totalorder %s68_s19, %s1629_s4  ;;  %p1635_p1 = scmp.lt.s32.totalorder %s1629_s4, %s1629_s4 }
  0x44   :  { %p1636_p2 = por %p1635_p1, %p1634_p0 }
  0x46   :  { %p1637_p3 = pnand %p1636_p2, %p1630_p13 }
  0x48   :  { %1640 = shalt.err (!%p1637_p3)
}
  0x49   :  { %73 = dma.hbm_to_vmem [thread:$0]  %s2084_s8, 3072, %s68_s19, [#allocation8], %s1744_s22, %s1744_s22, %s1745_s18  }
  0x4a   :  { %s1641_s20 = scalar_lea.hbm %s2088_s12, 1024 }
  0x4b   :  { %p1642_p4 = scmp.ne.s32.totalorder %s2088_s12, %s1641_s20  ;;  %p1645_p5 = scmp.lt.u32.totalorder %s1641_s20, %s2088_s12 }
  0x4d   :  { %p1647_p6 = pnand %p1645_p5, %p1642_p4 }
  0x4f   :  { %1650 = shalt.err (!%p1647_p6)
}
  0x50   :  { %s1651_s28 = scalar_lea.vmem %s96_s14, 1024  ;;  %p1656_p8 = scmp.lt.s32.totalorder %s96_s14, %s96_s14 }
  0x51   :  { %p1652_p7 = scmp.ne.s32.totalorder %s96_s14, %s1651_s28  ;;  %p1657_p9 = scmp.lt.s32.totalorder %s1651_s28, %s1651_s28 }
  0x53   :  { %p1658_p10 = por %p1657_p9, %p1656_p8 }
  0x55   :  { %p1659_p11 = pnand %p1658_p10, %p1652_p7 }
  0x57   :  { %1662 = shalt.err (!%p1659_p11)
}
  0x58   :  { %101 = dma.hbm_to_vmem [thread:$0]  %s2088_s12, 1024, %s96_s14, [#allocation11], %s1740_s0, %s1740_s0, %s1741_s17  }
  0x59   :  { %1729 = dma.done.wait [#allocation5], 1024  }
  0x5a   :  { %1730 = vsyncadd [#allocation5], 4294966272 }
  0x5b   :  { %1731 = dma.done.wait [#allocation8], 4096  }
  0x5c   :  { %1732 = vsyncadd [#allocation8], 4294963200 }
  0x5d   :  { %1733 = dma.done.wait [#allocation11], 4096  }
  0x5e   :  { %1734 = vsyncadd [#allocation11], 4294963200  ;;  %v1748_v0 = vmov 0.0   ;;  %vm1749_vm0 = vmmov 0   ;;  %v1439_v1 = vld [vmem:[#allocation4] sm:$0xff]   ;;  %v1440_v2 = vld [vmem:[#allocation4 + $0x8] sm:$0xff]  }
  0x5f   :  { %1296 = vmatprep.subr.bf16.mxu0 %v1748_v0  ;;  %1312 = vmatprep.mubr.msk.bf16.mxu0 %vm1749_vm0, %v1748_v0  ;;  %v1441_v3 = vld [vmem:[#allocation4 + $0x10] sm:$0xff]   ;;  %v1442_v4 = vld [vmem:[#allocation4 + $0x18] sm:$0xff]   ;;  %v1443_v5 = vld [vmem:[#allocation4 + $0x20] sm:$0xff]   ;;  %s2096_s19 = sld [smem:[#allocation22_spill]]  ;;  %vm231_vm1 = vcmask 1040384   ;;  %s1751_s29 = smov [#allocation14]  }
  0x60   :  { %1316 = vmatprep.subr.bf16.mxu1 %v1748_v0  ;;  %1332 = vmatprep.mubr.msk.bf16.mxu1 %vm1749_vm0, %v1748_v0  ;;  %v1444_v6 = vld [vmem:[#allocation4 + $0x28] sm:$0xff]   ;;  %v1445_v7 = vld [vmem:[#allocation4 + $0x30] sm:$0xff]   ;;  %v1928_v8 = vld [vmem:[%s2078_s2] sm:$0x1] }
  0x61   :  { %1297 = vmatpush3.bf16.msra.mxu0 %v1439_v1  ;;  %v1446_v9 = vld [vmem:[#allocation4 + $0x38] sm:$0xff]   ;;  %v1941_v11 = vpack.c.bf16 %v1928_v8, %v1928_v8  ;;  %v142_v13 = vld [vmem:[%s2081_s5] sm:$0x1]  ;;  %v1448_v21 = vld [vmem:[%s2079_s3 + $0x8] sm:$0xff]  }
  0x62   :  { %1298 = vmatprep.subr.bf16.mxu0 %v1748_v0  ;;  %v1447_v20 = vld [vmem:[%s2079_s3] sm:$0xff]   ;;  %v1449_v22 = vld [vmem:[%s2079_s3 + $0x10] sm:$0xff]   ;;  %v1450_v23 = vld [vmem:[%s2079_s3 + $0x18] sm:$0xff]  }
  0x63   :  { %1317 = vmatpush3.bf16.msra.mxu1 %v1447_v20  ;;  %v1451_v29 = vld [vmem:[%s2079_s3 + $0x20] sm:$0xff]   ;;  %v1452_v30 = vld [vmem:[%s2079_s3 + $0x28] sm:$0xff]   ;;  %v1453_v31 = vld [vmem:[%s2079_s3 + $0x30] sm:$0xff]  }
  0x64   :  { %1318 = vmatprep.subr.bf16.mxu1 %v1748_v0  ;;  %v1454_v32 = vld [vmem:[%s2079_s3 + $0x38] sm:$0xff]   ;;  %v1455_v33 = vld [vmem:[#allocation7] sm:$0xff]   ;;  %v1456_v34 = vld [vmem:[#allocation7 + $0x8] sm:$0xff]  }
  0x65   :  { %1299 = vmatpush3.bf16.msra.mxu0 %v1440_v2  ;;  %s122_s30 = scalar_lea.vmem %s2077_s1, %s2096_s19  ;;  %v1457_v35 = vld [vmem:[#allocation7 + $0x10] sm:$0xff]   ;;  %v1458_v36 = vld [vmem:[#allocation7 + $0x18] sm:$0xff]   ;;  %v1459_v37 = vld [vmem:[#allocation7 + $0x20] sm:$0xff]  }
  0x66   :  { %1300 = vmatprep.subr.bf16.mxu0 %v1748_v0  ;;  %v1937_v10 = vld [vmem:[%s122_s30] sm:$0x1]  ;;  %v1460_v38 = vld [vmem:[#allocation7 + $0x28] sm:$0xff]   ;;  %v1461_v39 = vld [vmem:[#allocation7 + $0x30] sm:$0xff]   ;;  %s1131_s30 = sshll.u32 %s1751_s29, 4  ;;  %s1132_s30 = int_to_ptr.vmem [resolvable:$true] %s1131_s30 }
  0x67   :  { %v125_v12 = vadd.bf16 %v1941_v11, %v1937_v10  ;;  %1319 = vmatpush3.bf16.msra.mxu1 %v1448_v21  ;;  %v1462_v44 = vld [vmem:[#allocation7 + $0x38] sm:$0xff]   ;;  %v1463_v45 = vld [vmem:[#allocation9] ss:$12 sps:$4 sm:$0xff]   ;;  %v1465_v46 = vld [vmem:[#allocation9 + $0x4] ss:$12 sps:$4 sm:$0xff]   ;;  %s1667_s1 = scalar_lea.vmem %s1132_s30, 32  ;;  %p1668_p13 = scmp.lt.s32.totalorder %s1132_s30, %s1132_s30 }
  0x68   :  { %1320 = vmatprep.subr.bf16.mxu1 %v1748_v0  ;;  %v1469_v47 = vld [vmem:[#allocation9 + $0x1c] ss:$12 sps:$4 sm:$0xff]   ;;  %v1467_v48 = vld [vmem:[#allocation9 + $0x18] ss:$12 sps:$4 sm:$0xff]   ;;  %v1473_v49 = vld [vmem:[#allocation9 + $0x34] ss:$12 sps:$4 sm:$0xff]  }
  0x69   :  { %1301 = vmatpush3.bf16.msra.mxu0 %v1441_v3  ;;  %v1471_v50 = vld [vmem:[#allocation9 + $0x30] ss:$12 sps:$4 sm:$0xff]   ;;  %v1477_v51 = vld [vmem:[#allocation9 + $0x4c] ss:$12 sps:$4 sm:$0xff]   ;;  %v1475_v52 = vld [vmem:[#allocation9 + $0x48] ss:$12 sps:$4 sm:$0xff]  }
  0x6a   :  { %1302 = vmatprep.subr.bf16.mxu0 %v1748_v0  ;;  %v1481_v53 = vld [vmem:[#allocation9 + $0x64] ss:$12 sps:$4 sm:$0xff]   ;;  %v1479_v54 = vld [vmem:[#allocation9 + $0x60] ss:$12 sps:$4 sm:$0xff]   ;;  %v1485_v55 = vld [vmem:[#allocation9 + $0x7c] ss:$12 sps:$4 sm:$0xff]  }
  0x6b   :  { %1321 = vmatpush3.bf16.msra.mxu1 %v1449_v22  ;;  %v1483_v56 = vld [vmem:[#allocation9 + $0x78] ss:$12 sps:$4 sm:$0xff]   ;;  %v1489_v57 = vld [vmem:[#allocation9 + $0x94] ss:$12 sps:$4 sm:$0xff]   ;;  %v1487_v58 = vld [vmem:[#allocation9 + $0x90] ss:$12 sps:$4 sm:$0xff]  }
  0x6c   :  { %1322 = vmatprep.subr.bf16.mxu1 %v1748_v0  ;;  %v1466_v63 = vld [vmem:[#allocation9 + $0x8] ss:$12 sps:$4 sm:$0xff]   ;;  %v1470_v3 = vld [vmem:[#allocation9 + $0x20] ss:$12 sps:$4 sm:$0xff]  }
  0x6d   :  { %1303 = vmatpush3.bf16.msra.mxu0 %v1442_v4  ;;  %v1474_v4 = vld [vmem:[#allocation9 + $0x38] ss:$12 sps:$4 sm:$0xff]  }
  0x6e   :  { %1304 = vmatprep.subr.bf16.mxu0 %v1748_v0 }
  0x6f   :  { %1323 = vmatpush3.bf16.msra.mxu1 %v1450_v23  ;;  %v1495_v23 = vld [vmem:[#allocation10] ss:$12 sps:$4 sm:$0xff]  }
  0x70   :  { %1324 = vmatprep.subr.bf16.mxu1 %v1748_v0 }
  0x71   :  { %1305 = vmatpush3.bf16.msra.mxu0 %v1443_v5  ;;  %v1478_v5 = vld [vmem:[#allocation9 + $0x50] ss:$12 sps:$4 sm:$0xff]  }
  0x72   :  { %1306 = vmatprep.subr.bf16.mxu0 %v1748_v0 }
  0x73   :  { %1325 = vmatpush3.bf16.msra.mxu1 %v1451_v29  ;;  %v1503_v29 = vld [vmem:[#allocation10 + $0x34] ss:$12 sps:$4 sm:$0xff]  }
  0x74   :  { %1326 = vmatprep.subr.bf16.mxu1 %v1748_v0 }
  0x75   :  { %1307 = vmatpush3.bf16.msra.mxu0 %v1444_v6  ;;  %v1482_v6 = vld [vmem:[#allocation9 + $0x68] ss:$12 sps:$4 sm:$0xff]  }
  0x76   :  { %1308 = vmatprep.subr.bf16.mxu0 %v1748_v0 }
  0x77   :  { %1327 = vmatpush3.bf16.msra.mxu1 %v1452_v30  ;;  %v1501_v30 = vld [vmem:[#allocation10 + $0x30] ss:$12 sps:$4 sm:$0xff]  }
  0x78   :  { %1328 = vmatprep.subr.bf16.mxu1 %v1748_v0 }
  0x79   :  { %1309 = vmatpush3.bf16.msra.mxu0 %v1445_v7  ;;  %v1486_v7 = vld [vmem:[#allocation9 + $0x80] ss:$12 sps:$4 sm:$0xff]  }
  0x7a   :  { %1310 = vmatprep.subr.bf16.mxu0 %v1748_v0 }
  0x7b   :  { %1329 = vmatpush3.bf16.msra.mxu1 %v1453_v31  ;;  %v1521_v31 = vld [vmem:[#allocation10 + $0x38] ss:$12 sps:$4 sm:$0xff]  }
  0x7c   :  { %1330 = vmatprep.subr.bf16.mxu1 %v1748_v0 }
  0x7d   :  { %1311 = vmatpush3.bf16.msra.mxu0 %v1446_v9  ;;  %v1490_v9 = vld [vmem:[#allocation9 + $0x98] ss:$12 sps:$4 sm:$0xff]  }
  0x7e   :  { %1336 = vmatprep.subr.bf16.mxu0 %v1748_v0 }
  0x7f   :  { %1331 = vmatpush3.bf16.msra.mxu1 %v1454_v32  ;;  %v1506_v32 = vld [vmem:[#allocation10 + $0x4c] ss:$12 sps:$4 sm:$0xff]  }
  0x80   :  { %1313 = vmatmul.mubr.bf16.vlgmr.msra.gmra.mrb[0].mxu0 %v125_v12  ;;  %635 = vmatprep.subr.bf16.mxu1 %v1465_v46  ;;  %v1491_v12 = vld [vmem:[#allocation9 + $0xa8] ss:$12 sps:$4 sm:$0xff]   ;;  %v1526_v46 = vld [vmem:[#allocation10 + $0xb0] ss:$12 sps:$4 sm:$0xff]  }
  0x81   :  { %1352 = vmatprep.mubr.msk.bf16.mxu0 %vm1749_vm0, %v1748_v0  ;;  %1337 = vmatpush3.bf16.msra.mxu0 %v1455_v33  ;;  %v1504_v33 = vld [vmem:[#allocation10 + $0x48] ss:$12 sps:$4 sm:$0xff]  }
  0x82   :  { %1338 = vmatprep.subr.bf16.mxu0 %v1748_v0 }
  0x85   :  { %1339 = vmatpush3.bf16.msra.mxu0 %v1456_v34  ;;  %v1522_v34 = vld [vmem:[#allocation10 + $0x50] ss:$12 sps:$4 sm:$0xff]  }
  0x86   :  { %1340 = vmatprep.subr.bf16.mxu0 %v1748_v0 }
  0x89   :  { %1341 = vmatpush3.bf16.msra.mxu0 %v1457_v35  ;;  %v1509_v35 = vld [vmem:[#allocation10 + $0x64] ss:$12 sps:$4 sm:$0xff]  }
  0x8a   :  { %1342 = vmatprep.subr.bf16.mxu0 %v1748_v0 }
  0x8d   :  { %1343 = vmatpush3.bf16.msra.mxu0 %v1458_v36  ;;  %v1507_v36 = vld [vmem:[#allocation10 + $0x60] ss:$12 sps:$4 sm:$0xff]  }
  0x8e   :  { %1344 = vmatprep.subr.bf16.mxu0 %v1748_v0 }
  0x91   :  { %1345 = vmatpush3.bf16.msra.mxu0 %v1459_v37  ;;  %v1523_v37 = vld [vmem:[#allocation10 + $0x68] ss:$12 sps:$4 sm:$0xff]  }
  0x92   :  { %1346 = vmatprep.subr.bf16.mxu0 %v1748_v0 }
  0x95   :  { %1347 = vmatpush3.bf16.msra.mxu0 %v1460_v38  ;;  %v1512_v38 = vld [vmem:[#allocation10 + $0x7c] ss:$12 sps:$4 sm:$0xff]  }
  0x96   :  { %1348 = vmatprep.subr.bf16.mxu0 %v1748_v0 }
  0x99   :  { %1349 = vmatpush3.bf16.msra.mxu0 %v1461_v39  ;;  %v1510_v39 = vld [vmem:[#allocation10 + $0x78] ss:$12 sps:$4 sm:$0xff]  }
  0x9a   :  { %1350 = vmatprep.subr.bf16.mxu0 %v1748_v0 }
  0x9d   :  { %1351 = vmatpush3.bf16.msra.mxu0 %v1462_v44  ;;  %v1519_v44 = vld [vmem:[#allocation10 + $0xac] ss:$12 sps:$4 sm:$0xff]  }
  0x9e   :  { %1356 = vmatprep.subr.bf16.mxu0 %v1748_v0 }
 0x153   :  { %v225_v14 = vpop.f32.mrb[0].mxu0 }
 0x154   :  { %v226_v15 = vadd.f32 %v225_v14, %v142_v13  ;;  %v1314_v16 = vpop.f32.mrb[1].mxu0  ;;  %v1494_v13 = vld [vmem:[#allocation9 + $0xb0] ss:$12 sps:$4 sm:$0xff]  }
 0x155   :  { %v228_v17 = vpop.f32.mrb[2].mxu0  ;;  %v1497_v14 = vld [vmem:[#allocation10 + $0x4] ss:$12 sps:$4 sm:$0xff]   ;;  %v367_v16 = vld [vmem:[%s2083_s7] sm:$0x1] }
 0x156   :  { %v1315_v18 = vpop.f32.mrb[3].mxu0  ;;  %v232_v19 = vsel %vm231_vm1, %v226_v15, -inf }
 0x157   :  { %233 = vmax.xlane.f32.xlu0 %v232_v19 }
 0x1e4   :  { %v234_v24 = vpop.xlane.xlu0 %233 }
 0x1e5   :  { %v235_v25 = vsub.f32 %v226_v15, %v234_v24  ;;  %v1750_v15 = vmov 0   ;;  %v1516_v24 = vld [vmem:[#allocation10 + $0x8] ss:$12 sps:$4 sm:$0xff]  }
 0x1e7   :  { %v236_v26 = vmul.f32 1.442695, %v235_v25 }
 0x1e9   :  { %1535 = vpow2.f32 %v236_v26  ;;  %v1500_v26 = vld [vmem:[#allocation10 + $0x1c] ss:$12 sps:$4 sm:$0xff]  }
 0x1f3   :  { %v1536_v27 = vpop.eup %1535 }
 0x1f4   :  { %v238_v28 = vsel %vm231_vm1, %v1536_v27, 0.0 }
 0x1f5   :  { %239 = vadd.xlane.f32.xlu0 %v238_v28  ;;  %v1520_v28 = vld [vmem:[#allocation10 + $0x20] ss:$12 sps:$4 sm:$0xff]  }
 0x282   :  { %v240_v40 = vpop.xlane.xlu0 %239 }
 0x283   :  { %1537 = vrcp.f32 %v240_v40  ;;  %v1524_v40 = vld [vmem:[#allocation10 + $0x80] ss:$12 sps:$4 sm:$0xff]  }
 0x28d   :  { %v1538_v41 = vpop.eup %1537 }
 0x28e   :  { %v242_v42 = vmul.f32 %v1538_v41, %v1536_v27  ;;  %v1498_v27 = vld [vmem:[#allocation10 + $0x18] ss:$12 sps:$4 sm:$0xff]   ;;  %v1515_v41 = vld [vmem:[#allocation10 + $0x94] ss:$12 sps:$4 sm:$0xff]  }
 0x290   :  { %v244_v43 = vpack.c.bf16 %v242_v42, %v242_v42  ;;  %243 = vst [vmem:[#allocation16] sm:$0x1] %v242_v42  ;;  %v1513_v42 = vld [vmem:[#allocation10 + $0x90] ss:$12 sps:$4 sm:$0xff]  }
 0x292   :  { %1333 = vmatmul.mubr.bf16.vlgmr.msra.gmra.mrb[0].mxu1 %v244_v43  ;;  %v1525_v43 = vld [vmem:[#allocation10 + $0x98] ss:$12 sps:$4 sm:$0xff]  }
 0x293   :  { %636 = vmatpush1.bf16.msra.mxu1 %v1463_v45  ;;  %667 = vmatprep.mubr.bf16.mxu1 %v1750_v15  ;;  %v1517_v45 = vld [vmem:[#allocation10 + $0xa8] ss:$12 sps:$4 sm:$0xff]  }
 0x294   :  { %637 = vmatprep.subr.bf16.mxu1 %v1469_v47  ;;  %v1527_v47 = vld [vmem:[#allocation12] sm:$0xff]  }
 0x297   :  { %638 = vmatpush1.bf16.msra.mxu1 %v1467_v48  ;;  %v1528_v48 = vld [vmem:[#allocation12 + $0x8] sm:$0xff]  }
 0x298   :  { %639 = vmatprep.subr.bf16.mxu1 %v1473_v49  ;;  %v1529_v49 = vld [vmem:[#allocation12 + $0x10] sm:$0xff]  }
 0x29b   :  { %640 = vmatpush1.bf16.msra.mxu1 %v1471_v50  ;;  %v1530_v50 = vld [vmem:[#allocation12 + $0x18] sm:$0xff]  }
 0x29c   :  { %641 = vmatprep.subr.bf16.mxu1 %v1477_v51  ;;  %v1532_v51 = vld [vmem:[#allocation12 + $0x28] sm:$0xff]  }
 0x29f   :  { %642 = vmatpush1.bf16.msra.mxu1 %v1475_v52  ;;  %v1533_v52 = vld [vmem:[#allocation12 + $0x30] sm:$0xff]  }
 0x2a0   :  { %643 = vmatprep.subr.bf16.mxu1 %v1481_v53  ;;  %v1534_v53 = vld [vmem:[#allocation12 + $0x38] sm:$0xff]  }
 0x2a3   :  { %644 = vmatpush1.bf16.msra.mxu1 %v1479_v54 }
 0x2a4   :  { %645 = vmatprep.subr.bf16.mxu1 %v1485_v55 }
 0x2a7   :  { %646 = vmatpush1.bf16.msra.mxu1 %v1483_v56 }
 0x2a8   :  { %647 = vmatprep.subr.bf16.mxu1 %v1489_v57 }
 0x2ab   :  { %648 = vmatpush1.bf16.msra.mxu1 %v1487_v58  ;;  %v620_v58 = vlaneseq }
 0x365   :  { %v343_v59 = vpop.f32.mrb[0].mxu1 }
 0x366   :  { %v349_v60 = vpack.c.bf16 %v343_v59, %v343_v59  ;;  %v1334_v61 = vpop.f32.mrb[1].mxu1  ;;  %v621_v59 = vshrl.u32 %v620_v58, 7 }
 0x367   :  { %v346_v62 = vpop.f32.mrb[2].mxu1  ;;  %v748_v61 = vld [vmem:[%s2087_s11] sm:$0x7] }
 0x368   :  { %v350_v1 = vadd.bf16 %v349_v60, %v1937_v10  ;;  %v1335_v2 = vpop.f32.mrb[3].mxu1  ;;  %v1493_v10 = vld [vmem:[#allocation9 + $0xac] ss:$12 sps:$4 sm:$0xff]   ;;  %v622_v60 = vsub.s32 0, %v621_v59  ;;  %v490_v62 = vld [vmem:[%s2086_s10] sm:$0x7] }
 0x369   :  { %649 = vmatprep.subr.bf16.mxu1 %v1493_v10 }
 0x36a   :  { %1353 = vmatmul.mubr.bf16.vlgmr.msra.gmra.mrb[4].mxu0 %v350_v1  ;;  %650 = vmatpush1.bf16.msra.mxu1 %v1491_v12  ;;  %v623_v1 = vrot.slane %v490_v62, %v622_v60  ;;  %v881_v2 = vrot.slane %v748_v61, %v622_v60 }
 0x36b   :  { %1357 = vmatpush3.bf16.msra.mxu0 %v1466_v63  ;;  %1372 = vmatprep.mubr.msk.bf16.mxu0 %vm1749_vm0, %v1748_v0  ;;  %v626_v63 = vsub.s32 1, %v621_v59 }
 0x36c   :  { %1358 = vmatprep.subr.bf16.mxu0 %v1748_v0  ;;  %893 = vmatprep.subr.bf16.mxu1 %v1497_v14 }
 0x36f   :  { %1359 = vmatpush3.bf16.msra.mxu0 %v1470_v3  ;;  %v885_v3 = vrot.slane %v748_v61, %v626_v63 }
 0x370   :  { %1360 = vmatprep.subr.bf16.mxu0 %v1748_v0 }
 0x373   :  { %1361 = vmatpush3.bf16.msra.mxu0 %v1474_v4  ;;  %v1416_v4 = vadd.f32 %v881_v2, %v623_v1 }
 0x374   :  { %1362 = vmatprep.subr.bf16.mxu0 %v1748_v0 }
 0x377   :  { %1363 = vmatpush3.bf16.msra.mxu0 %v1478_v5 }
 0x378   :  { %1364 = vmatprep.subr.bf16.mxu0 %v1748_v0 }
 0x37b   :  { %1365 = vmatpush3.bf16.msra.mxu0 %v1482_v6 }
 0x37c   :  { %1366 = vmatprep.subr.bf16.mxu0 %v1748_v0 }
 0x37f   :  { %1367 = vmatpush3.bf16.msra.mxu0 %v1486_v7 }
 0x380   :  { %1368 = vmatprep.subr.bf16.mxu0 %v1748_v0 }
 0x383   :  { %1369 = vmatpush3.bf16.msra.mxu0 %v1490_v9 }
 0x384   :  { %1370 = vmatprep.subr.bf16.mxu0 %v1748_v0 }
 0x387   :  { %1371 = vmatpush3.bf16.msra.mxu0 %v1494_v13 }
 0x388   :  { %1376 = vmatprep.subr.bf16.mxu0 %v1748_v0 }
 0x43d   :  { %v450_v17 = vpop.f32.mrb[4].mxu0 }
 0x43e   :  { %v451_v18 = vadd.f32 %v450_v17, %v367_v16  ;;  %v1354_v19 = vpop.f32.mrb[5].mxu0 }
 0x43f   :  { %v453_v20 = vpop.f32.mrb[6].mxu0 }
 0x440   :  { %v456_v21 = vmax.f32 %v451_v18, 0.0  ;;  %v1355_v22 = vpop.f32.mrb[7].mxu0 }
 0x441   :  { %v630_v22 = vsub.s32 2, %v621_v59 }
 0x442   :  { %v457_v25 = vpack.c.bf16 %v456_v21, %v456_v21 }
 0x444   :  { %668 = vmatmul.mubr.bf16.vlgmr.msra.gmra.mrb[4].mxu1 %v457_v25  ;;  %1373 = vmatmul.mubr.bf16.vlgmr.msra.gmra.mrb[8].mxu0 %v457_v25  ;;  %v631_v25 = vrot.slane %v490_v62, %v630_v22 }
 0x445   :  { %894 = vmatpush1.bf16.msra.mxu1 %v1495_v23  ;;  %1377 = vmatpush3.bf16.msra.mxu0 %v1516_v24  ;;  %v889_v23 = vrot.slane %v748_v61, %v630_v22 }
 0x446   :  { %895 = vmatprep.subr.bf16.mxu1 %v1500_v26  ;;  %1378 = vmatprep.subr.bf16.mxu0 %v1748_v0 }
 0x447   :  { %925 = vmatprep.mubr.bf16.mxu1 %v1750_v15  ;;  %1392 = vmatprep.mubr.msk.bf16.mxu0 %vm1749_vm0, %v1748_v0 }
 0x449   :  { %896 = vmatpush1.bf16.msra.mxu1 %v1498_v27  ;;  %1379 = vmatpush3.bf16.msra.mxu0 %v1520_v28 }
 0x44a   :  { %897 = vmatprep.subr.bf16.mxu1 %v1503_v29  ;;  %1380 = vmatprep.subr.bf16.mxu0 %v1748_v0 }
 0x44d   :  { %898 = vmatpush1.bf16.msra.mxu1 %v1501_v30  ;;  %1381 = vmatpush3.bf16.msra.mxu0 %v1521_v31 }
 0x44e   :  { %899 = vmatprep.subr.bf16.mxu1 %v1506_v32  ;;  %1382 = vmatprep.subr.bf16.mxu0 %v1748_v0 }
 0x451   :  { %900 = vmatpush1.bf16.msra.mxu1 %v1504_v33  ;;  %1383 = vmatpush3.bf16.msra.mxu0 %v1522_v34 }
 0x452   :  { %901 = vmatprep.subr.bf16.mxu1 %v1509_v35  ;;  %1384 = vmatprep.subr.bf16.mxu0 %v1748_v0 }
 0x455   :  { %902 = vmatpush1.bf16.msra.mxu1 %v1507_v36  ;;  %1385 = vmatpush3.bf16.msra.mxu0 %v1523_v37 }
 0x456   :  { %903 = vmatprep.subr.bf16.mxu1 %v1512_v38  ;;  %1386 = vmatprep.subr.bf16.mxu0 %v1748_v0 }
 0x459   :  { %904 = vmatpush1.bf16.msra.mxu1 %v1510_v39  ;;  %1387 = vmatpush3.bf16.msra.mxu0 %v1524_v40  ;;  %v1012_v39 = vld [vmem:[%s2089_s13] sm:$0x1]  ;;  %s1663_s13 = scalar_lea.vmem %s1132_s30, 16 }
 0x45a   :  { %905 = vmatprep.subr.bf16.mxu1 %v1515_v41  ;;  %1388 = vmatprep.subr.bf16.mxu0 %v1748_v0  ;;  %p1664_p12 = scmp.ne.s32.totalorder %s1132_s30, %s1663_s13  ;;  %p1669_p0 = scmp.lt.s32.totalorder %s1667_s1, %s1663_s13 }
 0x45c   :  { %p1670_p1 = por %p1669_p0, %p1668_p13 }
 0x45d   :  { %906 = vmatpush1.bf16.msra.mxu1 %v1513_v42  ;;  %1389 = vmatpush3.bf16.msra.mxu0 %v1525_v43 }
 0x45e   :  { %907 = vmatprep.subr.bf16.mxu1 %v1519_v44  ;;  %1390 = vmatprep.subr.bf16.mxu0 %v1748_v0  ;;  %p1671_p2 = pnand %p1670_p1, %p1664_p12 }
 0x461   :  { %908 = vmatpush1.bf16.msra.mxu1 %v1517_v45  ;;  %1391 = vmatpush3.bf16.msra.mxu0 %v1526_v46 }
 0x462   :  { %1396 = vmatprep.subr.bf16.mxu1 %v1748_v0 }
 0x464   :  { %926 = vmatmul.mubr.bf16.vlgmr.msra.gmra.mrb[4].mxu1 %v1941_v11  ;;  %1393 = vmatmul.mubr.bf16.vlgmr.msra.gmra.mrb[12].mxu0 %v1941_v11  ;;  %v1531_v11 = vld [vmem:[#allocation12 + $0x20] sm:$0xff]  }
 0x465   :  { %1412 = vmatprep.mubr.msk.bf16.mxu1 %vm1749_vm0, %v1748_v0  ;;  %1397 = vmatpush3.bf16.msra.mxu1 %v1527_v47 }
 0x466   :  { %1398 = vmatprep.subr.bf16.mxu1 %v1748_v0 }
 0x469   :  { %1399 = vmatpush3.bf16.msra.mxu1 %v1528_v48 }
 0x46a   :  { %1400 = vmatprep.subr.bf16.mxu1 %v1748_v0 }
 0x46d   :  { %1401 = vmatpush3.bf16.msra.mxu1 %v1529_v49 }
 0x46e   :  { %1402 = vmatprep.subr.bf16.mxu1 %v1748_v0 }
 0x471   :  { %1403 = vmatpush3.bf16.msra.mxu1 %v1530_v50 }
 0x472   :  { %1404 = vmatprep.subr.bf16.mxu1 %v1748_v0 }
 0x475   :  { %1405 = vmatpush3.bf16.msra.mxu1 %v1531_v11 }
 0x476   :  { %1406 = vmatprep.subr.bf16.mxu1 %v1748_v0 }
 0x479   :  { %1407 = vmatpush3.bf16.msra.mxu1 %v1532_v51 }
 0x47a   :  { %1408 = vmatprep.subr.bf16.mxu1 %v1748_v0 }
 0x47d   :  { %1409 = vmatpush3.bf16.msra.mxu1 %v1533_v52 }
 0x47e   :  { %1410 = vmatprep.subr.bf16.mxu1 %v1748_v0  ;;  %v627_v0 = vrot.slane %v490_v62, %v626_v63 }
 0x480   :  { %v1418_v6 = vadd.f32 %v885_v3, %v627_v0 }
 0x481   :  { %1411 = vmatpush3.bf16.msra.mxu1 %v1534_v53 }
 0x517   :  { %v710_v54 = vpop.f32.mrb[8].mxu0 }
 0x518   :  { %v1374_v55 = vpop.f32.mrb[9].mxu0  ;;  %v711_v29 = vadd.f32 %v710_v54, %v631_v25 }
 0x519   :  { %v713_v56 = vpop.f32.mrb[10].mxu0 }
 0x51a   :  { %v1375_v57 = vpop.f32.mrb[11].mxu0 }
 0x537   :  { %v927_v5 = vpop.f32.mrb[4].mxu1  ;;  %v968_v7 = vpop.f32.mrb[12].mxu0 }
 0x538   :  { %v1417_v9 = vadd.f32 %v1416_v4, %v927_v5  ;;  %v929_v10 = vpop.f32.mrb[5].mxu1  ;;  %v1394_v12 = vpop.f32.mrb[13].mxu0  ;;  %v969_v27 = vadd.f32 %v968_v7, %v889_v23 }
 0x539   :  { %v931_v13 = vpop.f32.mrb[6].mxu1  ;;  %v971_v14 = vpop.f32.mrb[14].mxu0  ;;  %v1419_v18 = vadd.f32 %v1418_v6, %v929_v10 }
 0x53a   :  { %v1232_v15 = vmul.f32 -1.442695, %v1417_v9  ;;  %v932_v16 = vpop.f32.mrb[7].mxu1  ;;  %v1395_v17 = vpop.f32.mrb[15].mxu0 }
 0x53b   :  { %v1233_v19 = vmul.f32 -1.442695, %v1419_v18 }
 0x53c   :  { %1539 = vpow2.f32 %v1232_v15 }
 0x53d   :  { %1541 = vpow2.f32 %v1233_v19 }
 0x546   :  { %v1540_v20 = vpop.eup %1539 }
 0x547   :  { %v982_v21 = vadd.f32 1.0, %v1540_v20  ;;  %v1542_v24 = vpop.eup %1541 }
 0x548   :  { %v983_v26 = vadd.f32 1.0, %v1542_v24 }
 0x549   :  { %1543 = vrcp.f32 %v982_v21 }
 0x54a   :  { %1545 = vrcp.f32 %v983_v26 }
 0x553   :  { %v1544_v28 = vpop.eup %1543 }
 0x554   :  { %v988_v30 = vmul.f32 %v1544_v28, %v969_v27  ;;  %v1546_v32 = vpop.eup %1545 }
 0x555   :  { %v991_v33 = vsub.f32 1.0, %v1546_v32  ;;  %v993_v36 = vmul.f32 %v1546_v32, %v1928_v8 }
 0x556   :  { %v989_v31 = vadd.f32 %v988_v30, %v711_v29 }
 0x558   :  { %1547 = vtanh.f32 %v989_v31 }
 0x562   :  { %v1548_v34 = vpop.eup %1547 }
 0x563   :  { %v992_v35 = vmul.f32 %v1548_v34, %v991_v33 }
 0x565   :  { %v994_v37 = vadd.f32 %v993_v36, %v992_v35 }
 0x567   :  { %v995_v38 = vpack.c.bf16 %v994_v37, %v994_v37  ;;  %1114 = vst [vmem:[#allocation14] sm:$0x1] %v994_v37 }
 0x569   :  { %1413 = vmatmul.mubr.bf16.vlgmr.msra.gmra.mrb[8].mxu1 %v995_v38 }
 0x63c   :  { %v1095_v40 = vpop.f32.mrb[8].mxu1 }
 0x63d   :  { %v1096_v41 = vadd.f32 %v1095_v40, %v1012_v39  ;;  %v1414_v42 = vpop.f32.mrb[9].mxu1 }
 0x63e   :  { %v1098_v43 = vpop.f32.mrb[10].mxu1 }
 0x63f   :  { %v1415_v44 = vpop.f32.mrb[11].mxu1  ;;  %v1101_v45 = vsel %vm231_vm1, %v1096_v41, -inf }
 0x640   :  { %1102 = vmax.xlane.f32.xlu1 %v1101_v45 }
 0x6cd   :  { %v1103_v46 = vpop.xlane.xlu1 %1102 }
 0x6ce   :  { %v1104_v47 = vsub.f32 %v1096_v41, %v1103_v46 }
 0x6d0   :  { %v1105_v48 = vmul.f32 1.442695, %v1104_v47 }
 0x6d2   :  { %1549 = vpow2.f32 %v1105_v48 }
 0x6dc   :  { %v1550_v8 = vpop.eup %1549 }
 0x6dd   :  { %v1107_v49 = vsel %vm231_vm1, %v1550_v8, 0.0 }
 0x6de   :  { %1108 = vadd.xlane.f32.xlu1 %v1107_v49 }
 0x6df   :  { %1674 = shalt.err (!%p1671_p2)
}
 0x6e0   :  { %s1675_s24 = scalar_lea.hbm %s2091_s15, 16 }
 0x6e1   :  { %p1676_p3 = scmp.ne.s32.totalorder %s2091_s15, %s1675_s24  ;;  %p1679_p4 = scmp.lt.u32.totalorder %s1675_s24, %s2091_s15 }
 0x6e3   :  { %p1681_p5 = pnand %p1679_p4, %p1676_p3 }
 0x6e5   :  { %1684 = shalt.err (!%p1681_p5)
}
 0x6e6   :  { %1134 = dma.vmem_to_hbm [thread:$0]  %s1132_s30, 16, %s2091_s15, [#allocation15]  }
 0x6e7   :  { %s1752_s25 = smov [#allocation16]  }
 0x6e8   :  { %s1141_s26 = sshll.u32 %s1752_s25, 4  ;;  %s1142_s26 = int_to_ptr.vmem [resolvable:$true] %s1141_s26 }
 0x6e9   :  { %s1685_s27 = scalar_lea.vmem %s1142_s26, 16  ;;  %s1689_s28 = scalar_lea.vmem %s1142_s26, 32 }
 0x6ea   :  { %p1686_p6 = scmp.ne.s32.totalorder %s1142_s26, %s1685_s27  ;;  %p1690_p7 = scmp.lt.s32.totalorder %s1142_s26, %s1142_s26 }
 0x6eb   :  { %p1691_p8 = scmp.lt.s32.totalorder %s1689_s28, %s1685_s27 }
 0x6ed   :  { %p1692_p9 = por %p1691_p8, %p1690_p7 }
 0x6ef   :  { %p1693_p10 = pnand %p1692_p9, %p1686_p6 }
 0x6f1   :  { %1696 = shalt.err (!%p1693_p10)
}
 0x6f2   :  { %s1697_s12 = scalar_lea.hbm %s2092_s16, 16 }
 0x6f3   :  { %p1698_p11 = scmp.ne.s32.totalorder %s2092_s16, %s1697_s12  ;;  %p1701_p12 = scmp.lt.u32.totalorder %s1697_s12, %s2092_s16 }
 0x6f5   :  { %p1703_p13 = pnand %p1701_p12, %p1698_p11 }
 0x6f7   :  { %1706 = shalt.err (!%p1703_p13)
}
 0x6f8   :  { %1144 = dma.vmem_to_hbm [thread:$0]  %s1142_s26, 16, %s2092_s16, [#allocation15]  }
 0x6f9   :  { %s1753_s19 = smov [#allocation13]  }
 0x6fa   :  { %s1121_s14 = sshll.u32 %s1753_s19, 4  ;;  %s1122_s14 = int_to_ptr.vmem [resolvable:$true] %s1121_s14 }
 0x6fb   :  { %s1707_s10 = scalar_lea.vmem %s1122_s14, 16  ;;  %s1711_s11 = scalar_lea.vmem %s1122_s14, 32 }
 0x6fc   :  { %p1708_p0 = scmp.ne.s32.totalorder %s1122_s14, %s1707_s10  ;;  %p1712_p1 = scmp.lt.s32.totalorder %s1122_s14, %s1122_s14 }
 0x6fd   :  { %p1713_p2 = scmp.lt.s32.totalorder %s1711_s11, %s1707_s10 }
 0x6ff   :  { %p1714_p3 = por %p1713_p2, %p1712_p1 }
 0x701   :  { %p1715_p4 = pnand %p1714_p3, %p1708_p0 }
 0x76b   :  { %v1109_v50 = vpop.xlane.xlu1 %1108 }
 0x76c   :  { %1551 = vlog2.f32 %v1109_v50 }
 0x776   :  { %v1552_v11 = vpop.eup %1551 }
 0x777   :  { %v1111_v51 = vmul.f32 0.6931472, %v1552_v11 }
 0x779   :  { %v1112_v52 = vsub.f32 %v1104_v47, %v1111_v51 }
 0x77b   :  { %1113 = vst [vmem:[#allocation13] sm:$0x1] %v1112_v52 }
 0x77c   :  { %1718 = shalt.err (!%p1715_p4)
}
 0x77d   :  { %s2097_s16 = sld [smem:[#allocation23_spill]] }
 0x783   :  { %s1719_s13 = scalar_lea.hbm %s2097_s16, 16 }
 0x784   :  { %p1720_p5 = scmp.ne.s32.totalorder %s2097_s16, %s1719_s13  ;;  %p1723_p6 = scmp.lt.u32.totalorder %s1719_s13, %s2097_s16 }
 0x786   :  { %p1725_p7 = pnand %p1723_p6, %p1720_p5 }
 0x788   :  { %1728 = shalt.err (!%p1725_p7)
}
 0x789   :  { %1124 = dma.vmem_to_hbm [thread:$0]  %s1122_s14, 16, %s2097_s16, [#allocation6]  }
 0x78a   :  { %1735 = dma.done.wait [#allocation6], 16  }
 0x78b   :  { %1736 = vsyncadd [#allocation6], 4294967280 }
 0x78c   :  { %1737 = dma.done.wait [#allocation15], 32  }
 0x78d   :  { %1738 = vsyncadd [#allocation15], 4294967264 }
 0x78e   :  { %1154 = vsyncpa [#allocation5], 1 }
 0x78f   :  { %1155 = vsyncpa [#allocation8], 1 }
 0x790   :  { %1156 = vsyncpa [#allocation11], 1 }
 0x791   :  { %1157 = vsyncpa [#allocation6], 1 }
 0x792   :  { %1158 = vsyncpa [#allocation15], 1 }

</bundles_post_ra>
